<compile_context>
chip_gen: v6e
topology: v6e:2x2x1
jax: 0.10.0
libtpu: 0.0.40
codegen_flags: <defaults>
</compile_context>

<pallas_src>
import functools

import jax
import jax.numpy as jnp
from jax import lax
from jax.experimental import pallas as pl
from jax.experimental.pallas import tpu as pltpu


def _round_up(x, m):
    return ((x + m - 1) // m) * m


def _style_loss_kernel(x_ref, tgt_ref, g_ref, loss_ref, *, inv_norm, inv_count):
    """Grid axis 0 tiles the reduction (w*h) dim; g_ref is the resident acc."""
    k = pl.program_id(0)

    @pl.when(k == 0)
    def _():
        g_ref[...] = jnp.zeros_like(g_ref)

    x = x_ref[...]  # (M_pad, tk) tile in compute dtype (bf16 by default)
    # X @ X.T with the contraction on the lane axis of BOTH operands:
    # avoids materializing x.T (XLU vxpose contends with MXU issue slots).
    g_ref[...] += lax.dot_general(
        x, x,
        dimension_numbers=(((1,), (1,)), ((), ())),
        preferred_element_type=jnp.float32,
    )

    @pl.when(k == pl.num_programs(0) - 1)
    def _():
        g = g_ref[...] * inv_norm
        g_ref[...] = g
        # Padded rows/cols are exactly zero in both g and tgt, so summing over
        # the padded matrix and dividing by the original M*M is the true mean.
        loss_ref[0, 0] = jnp.sum(jnp.abs(g - tgt_ref[...])) * inv_count


def gram_and_l1_loss(features, target_gram, norm, *, compute_dtype=jnp.bfloat16,
                     tk=None, x_vmem_budget_bytes=8 << 20):
    """features: (M, K); target_gram: (M, M) f32; norm = n*c*w*h.

    Returns (gram (M, M) f32, scalar f32 L1 loss).
    """
    m, k = features.shape
    assert target_gram.shape == (m, m)

    itemsize = jnp.dtype(compute_dtype).itemsize
    m_pad = max(_round_up(m, 128), 128)  # MXU-friendly, lane-dense output tiles

    if tk is None:
        # Largest K tile whose double-buffered stream fits the VMEM budget.
        tk_cap = (x_vmem_budget_bytes // (2 * m_pad * itemsize)) // 128 * 128
        tk_cap = int(min(max(tk_cap, 256), 4096))
        k128 = _round_up(k, 128)
        tk = k128 if k128 <= tk_cap else tk_cap
    tk = max(_round_up(int(tk), 128), 128)
    k_pad = _round_up(k, tk)
    num_k = k_pad // tk

    # Zero padding is exact: padded rows/cols contribute nothing to X @ X.T.
    feats = jnp.pad(features, ((0, m_pad - m), (0, k_pad - k))).astype(compute_dtype)
    tgt = jnp.pad(target_gram.astype(jnp.float32),
                  ((0, m_pad - m), (0, m_pad - m)))

    # Deepen the input pipeline only when there are enough K steps to overlap.
    n_x_buffers = 3 if num_k >= 3 else 2
    if n_x_buffers == 3:
        x_spec = pl.BlockSpec((m_pad, tk), lambda kk: (0, kk),
                              pipeline_mode=pl.Buffered(3))
    else:
        x_spec = pl.BlockSpec((m_pad, tk), lambda kk: (0, kk))

    vmem_est = (n_x_buffers * m_pad * tk * itemsize   # streamed X tiles
                + 2 * m_pad * m_pad * 4               # resident target + gram acc
                + (1 << 20))                          # headroom
    vmem_limit = int(min(max(2 * vmem_est, 16 << 20), 48 << 20))

    kernel = functools.partial(_style_loss_kernel,
                               inv_norm=1.0 / float(norm),
                               inv_count=1.0 / float(m * m))
    gram_pad, loss = pl.pallas_call(
        kernel,
        out_shape=(
            jax.ShapeDtypeStruct((m_pad, m_pad), jnp.float32),
            jax.ShapeDtypeStruct((1, 1), jnp.float32),
        ),
        grid_spec=pltpu.PrefetchScalarGridSpec(
            num_scalar_prefetch=0,
            grid=(num_k,),
            in_specs=[
                x_spec,                                          # streamed X tile
                pl.BlockSpec((m_pad, m_pad), lambda kk: (0, 0)),  # resident target
            ],
            out_specs=[
                pl.BlockSpec((m_pad, m_pad), lambda kk: (0, 0)),       # gram acc/out
                pl.BlockSpec(memory_space=pltpu.MemorySpace.SMEM),     # scalar loss
            ],
        ),
        compiler_params=pltpu.CompilerParams(
            dimension_semantics=("arbitrary",),   # K is a reduction axis
            vmem_limit_bytes=vmem_limit,
        ),
    )(feats, tgt)
    return gram_pad[:m, :m], loss[0, 0]


class StyleLoss:
    """JAX/Pallas port of the PyTorch StyleLoss module (L1 on Gram matrices)."""

    def __init__(self, target_feature, compute_dtype=jnp.bfloat16):
        n, c, w, h = target_feature.shape
        feats = target_feature.reshape(n * c, w * h).astype(jnp.float32)
        # Target Gram computed once at init (setup glue; kept in f32).
        self._target = (feats @ feats.T) / float(n * c * w * h)
        self._compute_dtype = compute_dtype
        self.loss = None

    def __call__(self, x):
        n, c, w, h = x.shape
        feats = x.reshape(n * c, w * h)
        _, loss = gram_and_l1_loss(feats, self._target, n * c * w * h,
                                   compute_dtype=self._compute_dtype)
        self.loss = loss
        return x  # forward returns the input unchanged


if __name__ == "__main__":
    key = jax.random.PRNGKey(0)
    k1, k2, k3, k4 = jax.random.split(key, 4)

    def ref_gram_f32(t):
        nn, cc, ww, hh = t.shape
        f = t.reshape(nn * cc, ww * hh).astype(jnp.float32)
        return (f @ f.T) / float(nn * cc * ww * hh)

    # --- Case 1: the module's nominal small shape ---------------------------
    n, c, w, h = 2, 4, 16, 16
    target_feature = jax.random.normal(k1, (n, c, w, h), dtype=jnp.float32)
    x = jax.random.normal(k2, (n, c, w, h), dtype=jnp.float32)

    module = StyleLoss(target_feature)
    out = module(x)
    jax.block_until_ready(out)
    loss = jax.block_until_ready(module.loss)

    assert out.shape == x.shape and bool(jnp.allclose(out, x))
    ref_loss = jnp.mean(jnp.abs(ref_gram_f32(x) - ref_gram_f32(target_feature)))
    assert jnp.allclose(loss, ref_loss, rtol=3e-2, atol=2e-4), (loss, ref_loss)

    # Matched-precision reference (same bf16 operand cast, f32 accumulation).
    fx = x.reshape(n * c, w * h).astype(jnp.bfloat16)
    gx = lax.dot_general(fx, fx, (((1,), (1,)), ((), ())),
                         preferred_element_type=jnp.float32) / float(n * c * w * h)
    ref_loss_matched = jnp.mean(jnp.abs(gx - ref_gram_f32(target_feature)))
    assert jnp.allclose(loss, ref_loss_matched, rtol=1e-3, atol=1e-6)

    # --- Case 2: non-128-multiple spatial size + multi-step K reduction -----
    n2, c2, w2, h2 = 1, 16, 20, 20           # M=16, K=400 -> pads to 512, 4 K-steps
    tf2 = jax.random.normal(k3, (n2, c2, w2, h2), dtype=jnp.float32)
    x2 = jax.random.normal(k4, (n2, c2, w2, h2), dtype=jnp.float32)
    tgt2 = ref_gram_f32(tf2)
    gram2, loss2 = gram_and_l1_loss(x2.reshape(n2 * c2, w2 * h2), tgt2,
                                    n2 * c2 * w2 * h2, tk=128)
    jax.block_until_ready((gram2, loss2))
    assert gram2.shape == (n2 * c2, n2 * c2)
    assert jnp.allclose(gram2, ref_gram_f32(x2), rtol=1e-2, atol=2e-4)
    ref_loss2 = jnp.mean(jnp.abs(ref_gram_f32(x2) - tgt2))
    assert jnp.allclose(loss2, ref_loss2, rtol=3e-2, atol=2e-4), (loss2, ref_loss2)

    print("KERNEL_OK")
</pallas_src>

<mosaic_0001>
module attributes {stable_mosaic.version = 11 : i64} {
  func.func @_style_loss_kernel(%arg0: i32, %arg1: memref<128x256xbf16, #tpu.memory_space<vmem>>, %arg2: memref<128x128xf32, #tpu.memory_space<vmem>>, %arg3: memref<128x128xf32, #tpu.memory_space<vmem>>, %arg4: memref<1x1xf32, #tpu.memory_space<smem>>) attributes {dimension_semantics = [#tpu.dimension_semantics<arbitrary>], iteration_bounds = array<i64: 1>, scalar_prefetch = 0 : i64, scratch_operands = 0 : i64, tpu.core_type = #tpu.core_type<tc>, window_params = [{transform_indices = @transform_0, window_bounds = array<i64: 128, 256>}, {pipeline_mode = #tpu.pipeline_mode<synchronous>, transform_indices = @transform_1, window_bounds = array<i64: 128, 128>}, {pipeline_mode = #tpu.pipeline_mode<synchronous>, transform_indices = @transform_2, window_bounds = array<i64: 128, 128>}, {transform_indices = @transform_3, window_bounds = array<i64: 1, 1>}]} {
    %c0_i32 = arith.constant 0 : i32
    %0 = arith.cmpi eq, %arg0, %c0_i32 : i32
    %1 = arith.extui %0 : i1 to i32
    %c0_i32_0 = arith.constant 0 : i32
    %2 = arith.cmpi ne, %1, %c0_i32_0 : i32
    scf.if %2 {
      %cst_8 = arith.constant 0.000000e+00 : f32
      %11 = vector.broadcast %cst_8 : f32 to vector<128x128xf32>
      %c0_9 = arith.constant 0 : index
      %c0_10 = arith.constant 0 : index
      %12 = vector.load %arg3[%c0_9, %c0_10] : memref<128x128xf32, #tpu.memory_space<vmem>>, vector<128x128xf32>
      tpu.vector_store %arg3[%c0_9, %c0_10], %11 {strides = array<i32>} : memref<128x128xf32, #tpu.memory_space<vmem>>, vector<128x128xf32>,
    } else {
    }
    %c0 = arith.constant 0 : index
    %c0_1 = arith.constant 0 : index
    %3 = vector.load %arg1[%c0, %c0_1] : memref<128x256xbf16, #tpu.memory_space<vmem>>, vector<128x256xbf16>
    %c0_2 = arith.constant 0 : index
    %c0_3 = arith.constant 0 : index
    %4 = vector.load %arg3[%c0_2, %c0_3] : memref<128x128xf32, #tpu.memory_space<vmem>>, vector<128x128xf32>
    %cst = arith.constant dense<0.000000e+00> : vector<128x128xf32>
    %5 = tpu.matmul %3, %3, %cst {dimension_numbers = #tpu.dot_dimension_numbers<[1], [1], [0], [0], [0, 0, 1, 0], [], []>} : vector<128x256xbf16>, vector<128x256xbf16>, vector<128x128xf32> -> vector<128x128xf32>
    %6 = arith.addf %4, %5 : vector<128x128xf32>
    %c0_4 = arith.constant 0 : index
    %c0_5 = arith.constant 0 : index
    %7 = vector.load %arg3[%c0_4, %c0_5] : memref<128x128xf32, #tpu.memory_space<vmem>>, vector<128x128xf32>
    tpu.vector_store %arg3[%c0_4, %c0_5], %6 {strides = array<i32>} : memref<128x128xf32, #tpu.memory_space<vmem>>, vector<128x128xf32>,
    %c0_i32_6 = arith.constant 0 : i32
    %8 = arith.cmpi eq, %arg0, %c0_i32_6 : i32
    %9 = arith.extui %8 : i1 to i32
    %c0_i32_7 = arith.constant 0 : i32
    %10 = arith.cmpi ne, %9, %c0_i32_7 : i32
    scf.if %10 {
      %c0_8 = arith.constant 0 : index
      %c0_9 = arith.constant 0 : index
      %11 = vector.load %arg3[%c0_8, %c0_9] : memref<128x128xf32, #tpu.memory_space<vmem>>, vector<128x128xf32>
      %cst_10 = arith.constant 4.8828125E-4 : f32
      %12 = vector.broadcast %cst_10 : f32 to vector<128x128xf32>
      %13 = arith.mulf %11, %12 : vector<128x128xf32>
      %c0_11 = arith.constant 0 : index
      %c0_12 = arith.constant 0 : index
      %14 = vector.load %arg3[%c0_11, %c0_12] : memref<128x128xf32, #tpu.memory_space<vmem>>, vector<128x128xf32>
      tpu.vector_store %arg3[%c0_11, %c0_12], %13 {strides = array<i32>} : memref<128x128xf32, #tpu.memory_space<vmem>>, vector<128x128xf32>,
      %c0_13 = arith.constant 0 : index
      %c0_14 = arith.constant 0 : index
      %15 = vector.load %arg2[%c0_13, %c0_14] : memref<128x128xf32, #tpu.memory_space<vmem>>, vector<128x128xf32>
      %16 = arith.subf %13, %15 : vector<128x128xf32>
      %17 = math.absf %16 : vector<128x128xf32>
      %18 = vector.shape_cast %17 : vector<128x128xf32> to vector<1x128x128xf32>
      %cst_15 = arith.constant dense<0.000000e+00> : vector<1xf32>
      %19 = vector.multi_reduction <add>, %18, %cst_15 [1, 2] : vector<1x128x128xf32> to vector<1xf32>
      %20 = vector.shape_cast %19 : vector<1xf32> to vector<1x1x1xf32>
      %21 = vector.extract %20[0, 0, 0] : f32 from vector<1x1x1xf32>
      %cst_16 = arith.constant 1.562500e-02 : f32
      %22 = arith.mulf %21, %cst_16 : f32
      %c0_17 = arith.constant 0 : index
      %c0_18 = arith.constant 0 : index
      %23 = memref.load %arg4[%c0_17, %c0_18] : memref<1x1xf32, #tpu.memory_space<smem>>
      memref.store %22, %arg4[%c0_17, %c0_18] : memref<1x1xf32, #tpu.memory_space<smem>>
    } else {
    }
    return
  }
  func.func @transform_0(%arg0: i32) -> (i32, i32) {
    %c0_i32 = arith.constant 0 : i32
    %c0_i32_0 = arith.constant 0 : i32
    return %c0_i32, %arg0 : i32, i32
  }
  func.func @transform_1(%arg0: i32) -> (i32, i32) {
    %c0_i32 = arith.constant 0 : i32
    %c0_i32_0 = arith.constant 0 : i32
    %c0_i32_1 = arith.constant 0 : i32
    return %c0_i32, %c0_i32_0 : i32, i32
  }
  func.func @transform_2(%arg0: i32) -> (i32, i32) {
    %c0_i32 = arith.constant 0 : i32
    %c0_i32_0 = arith.constant 0 : i32
    %c0_i32_1 = arith.constant 0 : i32
    return %c0_i32, %c0_i32_0 : i32, i32
  }
  func.func @transform_3(%arg0: i32) -> (i32, i32) {
    %c0_i32 = arith.constant 0 : i32
    %c0_i32_0 = arith.constant 0 : i32
    %c0_i32_1 = arith.constant 0 : i32
    return %c0_i32, %c0_i32_0 : i32, i32
  }
}

</mosaic_0001>

<bundles_post_ra>
// kernel: tpu_custom_call.1
= control target key start
LH: loop header
LB: loop body
LE: loop exit
PB: predicated region body
PF: predicated region fallthrough
CT: control target
= control target key end

     0   :  { %9 = vsyncpa [#allocation3], 0  ;;  %s670_s0 = inlined_call_operand.hbm [shape: bf16[128,256], index: 0, kind: input, shape index: {}]   ;;  %s671_s1 = inlined_call_operand.hbm [shape: f32[128,128], index: 1, kind: input, shape index: {}]   ;;  %s672_s2 = inlined_call_operand.hbm [shape: f32[128,128], index: 2, kind: output, shape index: {0}]   ;;  %s673_s3 = inlined_call_operand.hbm [shape: f32[1,1], index: 3, kind: output, shape index: {1}]  }
   0x1   :  { %10 = vsyncpa [#allocation7], 0 }
   0x2   :  { %11 = vsyncpa [#allocation4], 0 }
   0x3   :  { %12 = vsyncpa [#allocation5], 0  ;;  %s603_s12 = smov [#allocation2]  }
   0x4   :  { %s18_s13 = sshll.u32 %s603_s12, 4  ;;  %s19_s13 = int_to_ptr.vmem [resolvable:$true] %s18_s13 }
   0x5   :  { %s535_s14 = scalar_lea.vmem %s19_s13, 2048  ;;  %p540_p1 = scmp.lt.s32.totalorder %s19_s13, %s19_s13 }
   0x6   :  { %p536_p0 = scmp.ne.s32.totalorder %s19_s13, %s535_s14  ;;  %p541_p2 = scmp.lt.s32.totalorder %s535_s14, %s535_s14 }
   0x8   :  { %p542_p3 = por %p541_p2, %p540_p1 }
   0xa   :  { %p543_p4 = pnand %p542_p3, %p536_p0 }
   0xc   :  { %546 = shalt.err (!%p543_p4)
}
   0xd   :  { %s604_s15 = smov 128   ;;  %s605_s16 = smov 8  }
   0xe   :  { %24 = dma.hbm_to_vmem [thread:$0]  %s670_s0, 2048, %s19_s13, [#allocation3], %s604_s15, %s604_s15, %s605_s16  }
   0xf   :  { %s606_s19 = smov [#allocation6]  }
  0x10   :  { %s30_s20 = sshll.u32 %s606_s19, 4  ;;  %s31_s20 = int_to_ptr.vmem [resolvable:$true] %s30_s20 }
  0x11   :  { %s555_s21 = scalar_lea.vmem %s31_s20, 2048  ;;  %p560_p6 = scmp.lt.s32.totalorder %s31_s20, %s31_s20 }
  0x12   :  { %p556_p5 = scmp.ne.s32.totalorder %s31_s20, %s555_s21  ;;  %p561_p7 = scmp.lt.s32.totalorder %s555_s21, %s555_s21 }
  0x14   :  { %p562_p8 = por %p561_p7, %p560_p6 }
  0x16   :  { %p563_p9 = pnand %p562_p8, %p556_p5 }
  0x18   :  { %566 = shalt.err (!%p563_p9)
}
  0x19   :  { %36 = dma.hbm_to_vmem [thread:$0]  %s671_s1, 2048, %s31_s20, [#allocation7], %s604_s15, %s604_s15, %s605_s16  }
  0x1a   :  { %595 = dma.done.wait [#allocation3], 2048  }
  0x1b   :  { %596 = vsyncadd [#allocation3], 4294965248 }
  0x1c   :  { %597 = dma.done.wait [#allocation7], 2048  }
  0x1d   :  { %598 = vsyncadd [#allocation7], 4294965248  ;;  %v503_v0 = vld [vmem:[#allocation2 + $0x74] ss:$8 sps:$4 sm:$0xff]   ;;  %v505_v1 = vld [vmem:[#allocation2 + $0x70] ss:$8 sps:$4 sm:$0xff]  }
  0x1e   :  { %176 = vmatprep.subr.bf16.mxu0 %v503_v0  ;;  %v506_v2 = vld [vmem:[#allocation2 + $0x64] ss:$8 sps:$4 sm:$0xff]   ;;  %478 = vmatprep.subr.bf16.mxu1 %v503_v0  ;;  %v508_v4 = vld [vmem:[#allocation2 + $0x60] ss:$8 sps:$4 sm:$0xff]   ;;  %v509_v5 = vld [vmem:[#allocation2 + $0x54] ss:$8 sps:$4 sm:$0xff]  }
  0x1f   :  { %177 = vmatpush1.bf16.xpose.msra.mxu0 %v505_v1  ;;  %486 = vmatpush1.bf16.xpose.msra.mxu1 %v505_v1  ;;  %v512_v3 = vld [vmem:[#allocation2 + $0x44] ss:$8 sps:$4 sm:$0xff]   ;;  %v511_v7 = vld [vmem:[#allocation2 + $0x50] ss:$8 sps:$4 sm:$0xff]   ;;  %v514_v8 = vld [vmem:[#allocation2 + $0x40] ss:$8 sps:$4 sm:$0xff]  }
  0x20   :  { %178 = vmatprep.subr.bf16.mxu0 %v506_v2  ;;  %479 = vmatprep.subr.bf16.mxu1 %v506_v2  ;;  %v524_v6 = vld [vmem:[#allocation2 + $0x4] ss:$8 sps:$4 sm:$0xff]   ;;  %v515_v9 = vld [vmem:[#allocation2 + $0x34] ss:$8 sps:$4 sm:$0xff]   ;;  %v517_v10 = vld [vmem:[#allocation2 + $0x30] ss:$8 sps:$4 sm:$0xff]  }
  0x21   :  { %240 = vmatprep.mubr.bf16.mxu1 %v512_v3  ;;  %208 = vmatprep.mubr.bf16.mxu0 %v524_v6  ;;  %v518_v11 = vld [vmem:[#allocation2 + $0x24] ss:$8 sps:$4 sm:$0xff]   ;;  %v520_v12 = vld [vmem:[#allocation2 + $0x20] ss:$8 sps:$4 sm:$0xff]   ;;  %v521_v13 = vld [vmem:[#allocation2 + $0x14] ss:$8 sps:$4 sm:$0xff]  }
  0x22   :  { %v523_v14 = vld [vmem:[#allocation2 + $0x10] ss:$8 sps:$4 sm:$0xff]   ;;  %v526_v15 = vld [vmem:[#allocation2] ss:$8 sps:$4 sm:$0xff]   ;;  %s607_s0 = smov [#allocation8]  }
  0x23   :  { %v357_v36 = vld [vmem:[#allocation6 + $0x8] sm:$0xff]  ;;  %v356_v39 = vld [vmem:[#allocation6] sm:$0xff]  ;;  %v358_v40 = vld [vmem:[#allocation6 + $0x10] sm:$0xff]  ;;  %s436_s1 = sshll.u32 %s607_s0, 4  ;;  %s437_s1 = int_to_ptr.vmem [resolvable:$true] %s436_s1 }
  0x24   :  { %v359_v46 = vld [vmem:[#allocation6 + $0x18] sm:$0xff]  ;;  %v360_v55 = vld [vmem:[#allocation6 + $0x20] sm:$0xff]  ;;  %v361_v60 = vld [vmem:[#allocation6 + $0x28] sm:$0xff]  ;;  %s567_s24 = scalar_lea.vmem %s437_s1, 2048  ;;  %p572_p11 = scmp.lt.s32.totalorder %s437_s1, %s437_s1 }
  0x25   :  { %p568_p10 = scmp.ne.s32.totalorder %s437_s1, %s567_s24  ;;  %p573_p12 = scmp.lt.s32.totalorder %s567_s24, %s567_s24 }
  0x27   :  { %179 = vmatpush1.bf16.xpose.msra.mxu0 %v508_v4  ;;  %487 = vmatpush1.bf16.xpose.msra.mxu1 %v508_v4  ;;  %p574_p13 = por %p573_p12, %p572_p11 }
  0x28   :  { %180 = vmatprep.subr.bf16.mxu0 %v509_v5  ;;  %480 = vmatprep.subr.bf16.mxu1 %v509_v5 }
  0x29   :  { %p575_p0 = pnand %p574_p13, %p568_p10 }
  0x2f   :  { %181 = vmatpush1.bf16.xpose.msra.mxu0 %v511_v7  ;;  %488 = vmatpush1.bf16.xpose.msra.mxu1 %v511_v7 }
  0x30   :  { %182 = vmatprep.subr.bf16.mxu0 %v512_v3  ;;  %481 = vmatprep.subr.bf16.mxu1 %v512_v3 }
  0x37   :  { %183 = vmatpush1.bf16.xpose.msra.mxu0 %v514_v8  ;;  %489 = vmatpush1.bf16.xpose.msra.mxu1 %v514_v8 }
  0x38   :  { %184 = vmatprep.subr.bf16.mxu0 %v515_v9  ;;  %482 = vmatprep.subr.bf16.mxu1 %v515_v9 }
  0x3f   :  { %185 = vmatpush1.bf16.xpose.msra.mxu0 %v517_v10  ;;  %490 = vmatpush1.bf16.xpose.msra.mxu1 %v517_v10 }
  0x40   :  { %186 = vmatprep.subr.bf16.mxu0 %v518_v11  ;;  %483 = vmatprep.subr.bf16.mxu1 %v518_v11 }
  0x47   :  { %187 = vmatpush1.bf16.xpose.msra.mxu0 %v520_v12  ;;  %491 = vmatpush1.bf16.xpose.msra.mxu1 %v520_v12 }
  0x48   :  { %188 = vmatprep.subr.bf16.mxu0 %v521_v13  ;;  %484 = vmatprep.subr.bf16.mxu1 %v521_v13 }
  0x4f   :  { %189 = vmatpush1.bf16.xpose.msra.mxu0 %v523_v14  ;;  %492 = vmatpush1.bf16.xpose.msra.mxu1 %v523_v14 }
  0x50   :  { %190 = vmatprep.subr.bf16.mxu0 %v524_v6  ;;  %485 = vmatprep.subr.bf16.mxu1 %v524_v6 }
  0x57   :  { %191 = vmatpush1.bf16.xpose.msra.mxu0 %v526_v15  ;;  %493 = vmatpush1.bf16.xpose.msra.mxu1 %v526_v15 }
  0x5e   :  { %209 = vmatmul.mubr.bf16.vlgmr.msra.gmra.mxu0 %v526_v15  ;;  %241 = vmatmul.mubr.bf16.vlgmr.msra.gmra.mxu1 %v514_v8  ;;  %v362_v8 = vld [vmem:[#allocation6 + $0x30] sm:$0xff] }
  0x5f   :  { %216 = vmatprep.mubr.bf16.mxu0 %v521_v13  ;;  %248 = vmatprep.mubr.bf16.mxu1 %v509_v5 }
  0x66   :  { %217 = vmatmul.mubr.bf16.gmra.mxu0 %v523_v14  ;;  %249 = vmatmul.mubr.bf16.gmra.mxu1 %v511_v7 }
  0x67   :  { %224 = vmatprep.mubr.bf16.mxu0 %v518_v11  ;;  %256 = vmatprep.mubr.bf16.mxu1 %v506_v2 }
  0x6e   :  { %225 = vmatmul.mubr.bf16.gmra.mxu0 %v520_v12  ;;  %257 = vmatmul.mubr.bf16.gmra.mxu1 %v508_v4 }
  0x6f   :  { %232 = vmatprep.mubr.bf16.mxu0 %v515_v9  ;;  %264 = vmatprep.mubr.bf16.mxu1 %v503_v0 }
  0x76   :  { %233 = vmatmul.mubr.bf16.gmra.mxu0 %v517_v10  ;;  %265 = vmatmul.mubr.bf16.gmra.mxu1 %v505_v1 }
 0x11e   :  { %v210_v16 = vpop.f32.mrf.mxu0  ;;  %v242_v17 = vpop.f32.mrf.mxu1 }
 0x11f   :  { %v324_v20 = vmul.f32 0.00048828125, %v210_v16  ;;  %v641_v21 = vmul.f32 0.00048828125, %v242_v17 }
 0x120   :  { %v212_v18 = vpop.f32.mrf.mxu0  ;;  %v244_v19 = vpop.f32.mrf.mxu1 }
 0x121   :  { %340 = vst [vmem:[#allocation8] sm:$0xff] %v324_v20  ;;  %348 = vst [vmem:[#allocation8 + $0x40] sm:$0xff] %v641_v21  ;;  %v372_v47 = vsub.f32 %v324_v20, %v356_v39  ;;  %v363_v19 = vld [vmem:[#allocation6 + $0x38] sm:$0xff] }
 0x122   :  { %v213_v22 = vpop.f32.mrf.mxu0  ;;  %v245_v23 = vpop.f32.mrf.mxu1 }
 0x123   :  { %v325_v26 = vmul.f32 0.00048828125, %v213_v22  ;;  %v644_v27 = vmul.f32 0.00048828125, %v245_v23  ;;  %v388_v58 = vand.u32 2147483647, %v372_v47  ;;  %v364_v23 = vld [vmem:[#allocation6 + $0x40] sm:$0xff]  ;;  %v369_v47 = vld [vmem:[#allocation6 + $0x68] sm:$0xff] }
 0x124   :  { %v215_v24 = vpop.f32.mrf.mxu0  ;;  %v247_v25 = vpop.f32.mrf.mxu1 }
 0x125   :  { %341 = vst [vmem:[#allocation8 + $0x8] sm:$0xff] %v325_v26  ;;  %349 = vst [vmem:[#allocation8 + $0x48] sm:$0xff] %v644_v27  ;;  %v373_v43 = vsub.f32 %v325_v26, %v357_v36 }
 0x126   :  { %v218_v28 = vpop.f32.mrf.mxu0  ;;  %v250_v29 = vpop.f32.mrf.mxu1 }
 0x127   :  { %v326_v32 = vmul.f32 0.00048828125, %v218_v28  ;;  %v647_v33 = vmul.f32 0.00048828125, %v250_v29  ;;  %v389_v53 = vand.u32 2147483647, %v373_v43  ;;  %v365_v29 = vld [vmem:[#allocation6 + $0x48] sm:$0xff]  ;;  %v368_v43 = vld [vmem:[#allocation6 + $0x60] sm:$0xff] }
 0x128   :  { %v220_v30 = vpop.f32.mrf.mxu0  ;;  %v252_v31 = vpop.f32.mrf.mxu1  ;;  %v381_v36 = vsub.f32 %v644_v27, %v365_v29 }
 0x129   :  { %342 = vst [vmem:[#allocation8 + $0x10] sm:$0xff] %v326_v32  ;;  %350 = vst [vmem:[#allocation8 + $0x50] sm:$0xff] %v647_v33  ;;  %v374_v48 = vsub.f32 %v326_v32, %v358_v40  ;;  %v404_v2 = vadd.f32 %v389_v53, %v388_v58  ;;  %v380_v32 = vsub.f32 %v641_v21, %v364_v23 }
 0x12a   :  { %v221_v34 = vpop.f32.mrf.mxu0  ;;  %v253_v35 = vpop.f32.mrf.mxu1 }
 0x12b   :  { %v327_v41 = vmul.f32 0.00048828125, %v221_v34  ;;  %v650_v42 = vmul.f32 0.00048828125, %v253_v35  ;;  %v390_v59 = vand.u32 2147483647, %v374_v48  ;;  %v366_v34 = vld [vmem:[#allocation6 + $0x50] sm:$0xff] }
 0x12c   :  { %v223_v37 = vpop.f32.mrf.mxu0  ;;  %v255_v38 = vpop.f32.mrf.mxu1  ;;  %v382_v39 = vsub.f32 %v647_v33, %v366_v34  ;;  %v396_v40 = vand.u32 2147483647, %v380_v32 }
 0x12d   :  { %343 = vst [vmem:[#allocation8 + $0x18] sm:$0xff] %v327_v41  ;;  %351 = vst [vmem:[#allocation8 + $0x58] sm:$0xff] %v650_v42  ;;  %v375_v54 = vsub.f32 %v327_v41, %v359_v46  ;;  %v405_v7 = vadd.f32 %v404_v2, %v390_v59  ;;  %v367_v38 = vld [vmem:[#allocation6 + $0x58] sm:$0xff] }
 0x12e   :  { %v226_v44 = vpop.f32.mrf.mxu0  ;;  %v258_v45 = vpop.f32.mrf.mxu1 }
 0x12f   :  { %v328_v51 = vmul.f32 0.00048828125, %v226_v44  ;;  %v653_v52 = vmul.f32 0.00048828125, %v258_v45  ;;  %v391_v3 = vand.u32 2147483647, %v375_v54  ;;  %v383_v44 = vsub.f32 %v650_v42, %v367_v38  ;;  %v371_v54 = vld [vmem:[#allocation6 + $0x78] sm:$0xff] }
 0x130   :  { %v228_v49 = vpop.f32.mrf.mxu0  ;;  %v260_v50 = vpop.f32.mrf.mxu1  ;;  %v397_v45 = vand.u32 2147483647, %v381_v36 }
 0x131   :  { %344 = vst [vmem:[#allocation8 + $0x20] sm:$0xff] %v328_v51  ;;  %352 = vst [vmem:[#allocation8 + $0x60] sm:$0xff] %v653_v52  ;;  %v376_v63 = vsub.f32 %v328_v51, %v360_v55  ;;  %v406_v14 = vadd.f32 %v405_v7, %v391_v3  ;;  %v384_v48 = vsub.f32 %v653_v52, %v368_v43  ;;  %v398_v49 = vand.u32 2147483647, %v382_v39  ;;  %v370_v50 = vld [vmem:[#allocation6 + $0x70] sm:$0xff] }
 0x132   :  { %v229_v56 = vpop.f32.mrf.mxu0  ;;  %v261_v57 = vpop.f32.mrf.mxu1  ;;  %v399_v53 = vand.u32 2147483647, %v383_v44 }
 0x133   :  { %v329_v0 = vmul.f32 0.00048828125, %v229_v56  ;;  %v337_v1 = vmul.f32 0.00048828125, %v261_v57  ;;  %v392_v11 = vand.u32 2147483647, %v376_v63  ;;  %v400_v56 = vand.u32 2147483647, %v384_v48 }
 0x134   :  { %v231_v61 = vpop.f32.mrf.mxu0  ;;  %v263_v62 = vpop.f32.mrf.mxu1 }
 0x135   :  { %345 = vst [vmem:[#allocation8 + $0x28] sm:$0xff] %v329_v0  ;;  %v377_v6 = vsub.f32 %v329_v0, %v361_v60  ;;  %353 = vst [vmem:[#allocation8 + $0x68] sm:$0xff] %v337_v1  ;;  %v407_v24 = vadd.f32 %v406_v14, %v392_v11  ;;  %v385_v51 = vsub.f32 %v337_v1, %v369_v47 }
 0x136   :  { %v234_v4 = vpop.f32.mrf.mxu0  ;;  %v266_v5 = vpop.f32.mrf.mxu1 }
 0x137   :  { %v330_v12 = vmul.f32 0.00048828125, %v234_v4  ;;  %v338_v13 = vmul.f32 0.00048828125, %v266_v5  ;;  %v393_v17 = vand.u32 2147483647, %v377_v6  ;;  %v401_v58 = vand.u32 2147483647, %v385_v51 }
 0x138   :  { %v236_v9 = vpop.f32.mrf.mxu0  ;;  %v268_v10 = vpop.f32.mrf.mxu1 }
 0x139   :  { %346 = vst [vmem:[#allocation8 + $0x30] sm:$0xff] %v330_v12  ;;  %v378_v18 = vsub.f32 %v330_v12, %v362_v8  ;;  %354 = vst [vmem:[#allocation8 + $0x70] sm:$0xff] %v338_v13  ;;  %v408_v30 = vadd.f32 %v407_v24, %v393_v17  ;;  %v386_v55 = vsub.f32 %v338_v13, %v370_v50 }
 0x13a   :  { %v237_v15 = vpop.f32.mrf.mxu0  ;;  %v269_v16 = vpop.f32.mrf.mxu1 }
 0x13b   :  { %v394_v25 = vand.u32 2147483647, %v378_v18  ;;  %v331_v26 = vmul.f32 0.00048828125, %v237_v15  ;;  %v339_v28 = vmul.f32 0.00048828125, %v269_v16  ;;  %v402_v60 = vand.u32 2147483647, %v386_v55 }
 0x13c   :  { %v239_v20 = vpop.f32.mrf.mxu0  ;;  %v271_v22 = vpop.f32.mrf.mxu1 }
 0x13d   :  { %347 = vst [vmem:[#allocation8 + $0x38] sm:$0xff] %v331_v26  ;;  %v379_v31 = vsub.f32 %v331_v26, %v363_v19  ;;  %355 = vst [vmem:[#allocation8 + $0x78] sm:$0xff] %v339_v28  ;;  %v409_v37 = vadd.f32 %v408_v30, %v394_v25  ;;  %v387_v57 = vsub.f32 %v339_v28, %v371_v54 }
 0x13f   :  { %v395_v35 = vand.u32 2147483647, %v379_v31  ;;  %v403_v61 = vand.u32 2147483647, %v387_v57 }
 0x141   :  { %v410_v41 = vadd.f32 %v409_v37, %v395_v35 }
 0x143   :  { %v411_v46 = vadd.f32 %v410_v41, %v396_v40 }
 0x145   :  { %v412_v21 = vadd.f32 %v411_v46, %v397_v45 }
 0x147   :  { %v413_v27 = vadd.f32 %v412_v21, %v398_v49 }
 0x149   :  { %v414_v33 = vadd.f32 %v413_v27, %v399_v53 }
 0x14b   :  { %v415_v59 = vadd.f32 %v414_v33, %v400_v56 }
 0x14d   :  { %v416_v42 = vadd.f32 %v415_v59, %v401_v58 }
 0x14f   :  { %v417_v62 = vadd.f32 %v416_v42, %v402_v60 }
 0x151   :  { %v418_v63 = vadd.f32 %v417_v62, %v403_v61 }
 0x153   :  { %419 = vadd.xlane.f32.xlu0 %v418_v63 }
 0x154   :  { %578 = shalt.err (!%p575_p0)
}
 0x155   :  { %442 = dma.vmem_to_hbm [thread:$0]  %s437_s1, 2048, %s672_s2, [#allocation4], %s604_s15, %s604_s15, %s605_s16  }
 0x156   :  { %s608_s29 = smov [#allocation9]  }
 0x1dc   :  { %v420_v52 = vpop.xlane.xlu0 %419 }
 0x1dd   :  { %v421_v0 = vrot.slane %v420_v52, 4 }
 0x1df   :  { %v422_v1 = vadd.f32 %v421_v0, %v420_v52 }
 0x1e1   :  { %v423_v2 = vrot.slane %v422_v1, 2 }
 0x1e3   :  { %v424_v3 = vadd.f32 %v423_v2, %v422_v1 }
 0x1e5   :  { %v425_v4 = vrot.slane %v424_v3, 1 }
 0x1e7   :  { %v426_v5 = vadd.f32 %v425_v4, %v424_v3 }
 0x1e9   :  { %494 = vpush %v426_v5 }
 0x21a   :  { %s495_s27 = spop %494 }
 0x21b   :  { %s428_s28 = smul.f32 0.015625, %s495_s27 }
 0x21d   :  { %430 = sst [smem:[#allocation9]] %s428_s28 }
 0x21e   :  { %450 = dma.smem_to_hbm %s608_s29, 16, %s673_s3, [#allocation5]  }
 0x21f   :  { %599 = dma.done.wait [#allocation4], 2048  }
 0x220   :  { %600 = vsyncadd [#allocation4], 4294965248 }
 0x221   :  { %601 = dma.done.wait [#allocation5], 16  }
 0x222   :  { %602 = vsyncadd [#allocation5], 4294967280 }
 0x223   :  { %457 = sfence }
 0x224   :  { %458 = vsyncpa [#allocation3], 1 }
 0x225   :  { %459 = vsyncpa [#allocation7], 1 }
 0x226   :  { %460 = vsyncpa [#allocation4], 1 }
 0x227   :  { %461 = vsyncpa [#allocation5], 1 }

</bundles_post_ra>
